<compile_context>
chip_gen: v7x
topology: tpu7x:2x2x1
jax: 0.10.0
libtpu: 0.0.40
codegen_flags: <defaults>
</compile_context>

<pallas_src>
import jax
import jax.numpy as jnp
from jax.experimental import pallas as pl
from jax.experimental.pallas import tpu as pltpu


def conv_bn_silu_kernel(x_ref, w_ref, bias_ref, o_ref):
    # x_ref   : (Cin, TM)   bf16   (spatial tile of one image, channels first)
    # w_ref   : (Cout, Cin) bf16   (1x1 conv weight with BN scale folded in)
    # bias_ref: (Cout, 1)   f32    (folded BN bias)
    # o_ref   : (Cout, TM)         (lane-dense output tile)
    y = jnp.dot(w_ref[...], x_ref[...], preferred_element_type=jnp.float32)
    y = y + bias_ref[...]                       # folded BatchNorm bias (f32)
    o_ref[...] = (y * jax.nn.sigmoid(y)).astype(o_ref.dtype)   # SiLU


def conv_forward(x_nchw, weight, gamma, beta, run_mean, run_var,
                 eps=1e-5, tm=1024, out_dtype=jnp.float32):
    """Conv.forward (k=1, s=1, g=1, bias=False, act=SiLU, BN eval mode).

    x_nchw : [N, c1, H, W]
    weight : [c2, c1, 1, 1]  (nn.Conv2d 1x1 weight, bias=False)
    gamma, beta, run_mean, run_var : [c2]  (BatchNorm2d eval statistics)
    Returns: [N, c2, H, W]
    """
    N, c1, H, W = x_nchw.shape
    c2 = weight.shape[0]
    HW = H * W

    # Channels-first flattening: a free reshape, no layout passes over HBM.
    x = x_nchw.reshape(N, c1, HW).astype(jnp.bfloat16)

    # Fold BatchNorm (eval) into the conv weight + a per-channel bias.
    scale = gamma / jnp.sqrt(run_var + eps)                       # [c2]
    bias = (beta - run_mean * scale).astype(jnp.float32).reshape(c2, 1)
    w_folded = (weight.reshape(c2, c1) * scale[:, None]).astype(jnp.bfloat16)

    # Spatial (lane) tile: multiple of 128, or the full row when HW is small.
    if tm >= HW:
        tm_eff = HW
    else:
        tm_eff = max(128, (tm // 128) * 128)
    n_sp = pl.cdiv(HW, tm_eff)

    cost = pl.CostEstimate(
        flops=2 * N * HW * c1 * c2,
        transcendentals=N * HW * c2,
        bytes_accessed=x.size * 2 + w_folded.size * 2 + N * c2 * HW * jnp.dtype(out_dtype).itemsize,
    )

    out = pl.pallas_call(
        conv_bn_silu_kernel,
        out_shape=jax.ShapeDtypeStruct((N, c2, HW), out_dtype),
        grid_spec=pltpu.PrefetchScalarGridSpec(
            num_scalar_prefetch=0,
            grid=(N, n_sp),
            in_specs=[
                # activation tile: batch dim squeezed, channels x spatial lanes
                pl.BlockSpec((None, c1, tm_eff), lambda n, j: (n, 0, j)),
                # folded weight: resident, same block every step
                pl.BlockSpec((c2, c1), lambda n, j: (0, 0)),
                # folded BN bias
                pl.BlockSpec((c2, 1), lambda n, j: (0, 0)),
            ],
            out_specs=pl.BlockSpec((None, c2, tm_eff), lambda n, j: (n, 0, j)),
        ),
        compiler_params=pltpu.CompilerParams(
            dimension_semantics=("parallel", "parallel")),
        cost_estimate=cost,
    )(x, w_folded, bias)

    # Free reshape back to NCHW (1x1 conv, stride 1, no padding -> same H, W).
    return out.reshape(N, c2, H, W)


def conv_reference(x_nchw, weight, gamma, beta, run_mean, run_var, eps=1e-5):
    """Pure-JAX (f32) reference for correctness checking."""
    c2, c1 = weight.shape[0], weight.shape[1]
    y = jnp.einsum("nchw,oc->nohw", x_nchw, weight.reshape(c2, c1))   # 1x1 conv, no bias
    scale = gamma / jnp.sqrt(run_var + eps)
    bias = beta - run_mean * scale
    y = y * scale[None, :, None, None] + bias[None, :, None, None]    # BatchNorm (eval)
    return y * jax.nn.sigmoid(y)                                      # SiLU


if __name__ == "__main__":
    key = jax.random.PRNGKey(0)
    k_x, k_w, k_g, k_b, k_m, k_v = jax.random.split(key, 6)

    # Small shapes consistent with the module: Conv(c1=4, c2=8, k=1), x: [2, 4, 16, 16]
    N, c1, H, W = 2, 4, 16, 16
    c2 = 8

    x = jax.random.normal(k_x, (N, c1, H, W), dtype=jnp.float32)

    # Deterministic synthetic parameters (no checkpoint loading).
    weight = jax.random.normal(k_w, (c2, c1, 1, 1), dtype=jnp.float32) * 0.1   # Conv2d(4->8, k=1, bias=False)
    gamma = 1.0 + 0.1 * jax.random.normal(k_g, (c2,), dtype=jnp.float32)       # BN weight
    beta = 0.1 * jax.random.normal(k_b, (c2,), dtype=jnp.float32)              # BN bias
    run_mean = 0.05 * jax.random.normal(k_m, (c2,), dtype=jnp.float32)         # BN running_mean
    run_var = 1.0 + 0.1 * jax.random.uniform(k_v, (c2,), dtype=jnp.float32)    # BN running_var

    out = conv_forward(x, weight, gamma, beta, run_mean, run_var)
    out = jax.block_until_ready(out)

    ref = conv_reference(x, weight, gamma, beta, run_mean, run_var)
    assert out.shape == (N, c2, H, W), out.shape
    # bf16 MXU inputs vs f32 reference -> loosened tolerance (still catches real bugs).
    assert jnp.allclose(out.astype(jnp.float32), ref, atol=5e-2, rtol=5e-2), \
        "mismatch vs pure-JAX reference"

    print("KERNEL_OK")
</pallas_src>

<mosaic_0001>
module attributes {stable_mosaic.version = 11 : i64} {
  func.func @conv_bn_silu_kernel(%arg0: i32, %arg1: i32, %arg2: memref<1x4x256xbf16, #tpu.memory_space<vmem>>, %arg3: memref<8x4xbf16, #tpu.memory_space<vmem>>, %arg4: memref<8x1xf32, #tpu.memory_space<vmem>>, %arg5: memref<1x8x256xf32, #tpu.memory_space<vmem>>) attributes {dimension_semantics = [#tpu.dimension_semantics<parallel>, #tpu.dimension_semantics<parallel>], iteration_bounds = array<i64: 2, 1>, scalar_prefetch = 0 : i64, scratch_operands = 0 : i64, tpu.core_type = #tpu.core_type<tc>, window_params = [{transform_indices = @transform_0, window_bounds = array<i64: 1, 4, 256>}, {pipeline_mode = #tpu.pipeline_mode<synchronous>, transform_indices = @transform_1, window_bounds = array<i64: 8, 4>}, {pipeline_mode = #tpu.pipeline_mode<synchronous>, transform_indices = @transform_2, window_bounds = array<i64: 8, 1>}, {transform_indices = @transform_3, window_bounds = array<i64: 1, 8, 256>}]} {
    %c0 = arith.constant 0 : index
    %c0_0 = arith.constant 0 : index
    %0 = vector.load %arg3[%c0, %c0_0] : memref<8x4xbf16, #tpu.memory_space<vmem>>, vector<8x4xbf16>
    %c0_1 = arith.constant 0 : index
    %c0_2 = arith.constant 0 : index
    %c0_3 = arith.constant 0 : index
    %1 = vector.load %arg2[%c0_1, %c0_2, %c0_3] : memref<1x4x256xbf16, #tpu.memory_space<vmem>>, vector<1x4x256xbf16>
    %2 = vector.shape_cast %1 : vector<1x4x256xbf16> to vector<4x256xbf16>
    %cst = arith.constant dense<0.000000e+00> : vector<8x256xf32>
    %3 = tpu.matmul %0, %2, %cst {dimension_numbers = #tpu.dot_dimension_numbers<[1], [0], [0], [1], [0, 0, 1, 1], [], []>} : vector<8x4xbf16>, vector<4x256xbf16>, vector<8x256xf32> -> vector<8x256xf32>
    %c0_4 = arith.constant 0 : index
    %c0_5 = arith.constant 0 : index
    %4 = vector.load %arg4[%c0_4, %c0_5] : memref<8x1xf32, #tpu.memory_space<vmem>>, vector<8x1xf32>
    %5 = vector.broadcast %4 : vector<8x1xf32> to vector<8x256xf32>
    %6 = arith.addf %3, %5 : vector<8x256xf32>
    %7 = arith.negf %6 : vector<8x256xf32>
    %8 = math.exp %7 : vector<8x256xf32>
    %cst_6 = arith.constant 1.000000e+00 : f32
    %9 = vector.broadcast %cst_6 : f32 to vector<8x256xf32>
    %10 = arith.addf %9, %8 : vector<8x256xf32>
    %11 = arith.divf %9, %10 : vector<8x256xf32>
    %12 = arith.mulf %6, %11 : vector<8x256xf32>
    %c0_7 = arith.constant 0 : index
    %c0_8 = arith.constant 0 : index
    %c0_9 = arith.constant 0 : index
    %13 = vector.load %arg5[%c0_7, %c0_8, %c0_9] : memref<1x8x256xf32, #tpu.memory_space<vmem>>, vector<1x8x256xf32>
    %14 = vector.shape_cast %13 : vector<1x8x256xf32> to vector<8x256xf32>
    %15 = vector.shape_cast %12 : vector<8x256xf32> to vector<1x8x256xf32>
    tpu.vector_store %arg5[%c0_7, %c0_8, %c0_9], %15 {strides = array<i32>} : memref<1x8x256xf32, #tpu.memory_space<vmem>>, vector<1x8x256xf32>,
    return
  }
  func.func @transform_0(%arg0: i32, %arg1: i32) -> (i32, i32, i32) {
    %c0_i32 = arith.constant 0 : i32
    %c0_i32_0 = arith.constant 0 : i32
    return %arg0, %c0_i32, %arg1 : i32, i32, i32
  }
  func.func @transform_1(%arg0: i32, %arg1: i32) -> (i32, i32) {
    %c0_i32 = arith.constant 0 : i32
    %c0_i32_0 = arith.constant 0 : i32
    %c0_i32_1 = arith.constant 0 : i32
    return %c0_i32, %c0_i32_0 : i32, i32
  }
  func.func @transform_2(%arg0: i32, %arg1: i32) -> (i32, i32) {
    %c0_i32 = arith.constant 0 : i32
    %c0_i32_0 = arith.constant 0 : i32
    %c0_i32_1 = arith.constant 0 : i32
    return %c0_i32, %c0_i32_0 : i32, i32
  }
  func.func @transform_3(%arg0: i32, %arg1: i32) -> (i32, i32, i32) {
    %c0_i32 = arith.constant 0 : i32
    %c0_i32_0 = arith.constant 0 : i32
    return %arg0, %c0_i32, %arg1 : i32, i32, i32
  }
}

</mosaic_0001>

<bundles_post_ra>
// kernel: tpu_custom_call.1
= control target key start
LH: loop header
LB: loop body
LE: loop exit
PB: predicated region body
PF: predicated region fallthrough
CT: control target
= control target key end

     0   :  { %8 = vsyncpa [#allocation3], 0  ;;  %s684_s0 = inlined_call_operand.vmem [shape: bf16[2,4,256], index: 0, kind: input, shape index: {}]   ;;  %s685_s1 = inlined_call_operand.vmem [shape: bf16[8,4], index: 1, kind: input, shape index: {}]   ;;  %s686_s2 = inlined_call_operand.vmem [shape: f32[8,1], index: 2, kind: input, shape index: {}]   ;;  %s687_s3 = inlined_call_operand.hbm [shape: f32[2,8,256], index: 3, kind: output, shape index: {}]  }
   0x1   :  { %10 = vsyncpa [#allocation3 + $0x1], 0  ;;  %s566_s12 = smov 0   ;;  %s568_s13 = smov 0  }
   0x2   :  { %s570_s14 = smov 0   ;;  %s572_s15 = smov 0  }
   0x3   :  { %s574_s16 = smov 0   ;;  %s576_s17 = smov 0  }
   0x4 LB: > { %s379_s18 = sadd.s32 4294967295, %s542_s17   ;;  %s380_s19 = sadd.s32 4294967294, %s542_s17   ;;  %s542_s17 = sphi %s576_s17, %s16_s17   ;;  %s538_s16 = sphi %s574_s16, %s694_s16   ;;  %s534_s15 = sphi %s572_s15, %s693_s15   ;;  %s530_s14 = sphi %s570_s14, %s692_s14   ;;  %s526_s13 = sphi %s568_s13, %s691_s13   ;;  %s522_s12 = sphi %s566_s12, %s690_s12  }
   0x5   : > { %s28_s20 = sadd.s32 1, %s538_s16  ;;  %s107_s21 = sadd.s32 1, %s530_s14 }
   0x6   : > { %p30_p0 = scmp.ge.s32.totalorder %s28_s20, 2  ;;  %p117_p1 = scmp.ne.s32.totalorder %s530_s14, %s526_s13 }
   0x7   : > { %p118_p2 = scmp.eq.s32.totalorder %s379_s18, 1  ;;  %p123_p3 = scmp.ne.s32.totalorder %s526_s13, %s522_s12 }
   0x8   : > { %s696_s20 = smov (%p30_p0, %s28_s20), 0  ;;  %p124_p5 = scmp.eq.s32.totalorder %s380_s19, 1 }
   0x9   : > { %p606_p4 = por %p118_p2, %p117_p1  ;;  %s102_s23 = ssub.s32 %s538_s16, %s696_s20 }
   0xa   : > { %p383_p6 = scmp.ge.s32.totalorder %s542_s17, 1  ;;  %p105_p7 = scmp.eq.s32.totalorder %s102_s23, 0 }
   0xb   : > { %p613_p8 = por %p124_p5, %p123_p3  ;;  %p161_p9 = scmp.lt.s32.totalorder %s542_s17, 3 }
   0xc   : > { %s619_s25 = scalar_select %p105_p7, %s530_s14, %s107_s21  }
   0xd   : > { %p162_p10 = pnand %p383_p6, %p161_p9 }
   0xe   : > { %p190_p11 = scmp.lt.s32.totalorder (!%p162_p10), %s534_s15, 1  ;;  %v544_v0 = vmov (!%p162_p10), 0   ;;  %v203_v1 = vld [vmem:[%s686_s2] sm:$0xff] (!%p162_p10)  ;;  %vm222_vm0 = vcmask (!%p162_p10), 1041408   ;;  %vm218_vm1 = vcmask (!%p162_p10), 31744   ;;  %s186_s8 = sand.u32 (!%p162_p10), 1, %s526_s13  }
   0xf   : > { %165 = sbr.rel (%p162_p10) target bundleno = 290 (0x122), region = 32  ;;  %261 = vmatprep.mubr.bf16.mxu0 (!%p162_p10), %v544_v0  ;;  %455 = vset.pattern.permute.xlu0 (!%p162_p10), %v544_v0  ;;  %v201_v5 = vld [vmem:[%s685_s1] sm:$0xf] (!%p162_p10)  ;;  %s384_s9 = sshll.u32 (!%p162_p10), %s186_s8, 4 }
  0x10   : > { %206 = vperm.xlu0 (!%p162_p10), %455, %v203_v1   ;;  %s398_s10 = sshll.u32 (!%p162_p10), %s534_s15, 8  ;;  %s188_s11 = scalar_lea.vmem (!%p162_p10), [#allocation2], %s384_s9 }
  0x11   : > { %s303_s18 = sshll.u32 (!%p162_p10), %s188_s11, 4  ;;  %s637_s23 = scalar_lea.hbm (!%p162_p10), %s687_s3, %s398_s10  ;;  %s639_s18 = int_to_ptr.vmem [resolvable:$true] %s303_s18 }
  0x12   : > { %s287_s26 = scalar_lea.sflag (!%p162_p10), [#allocation3], %s186_s8  ;;  %s545_s27 = smov (!%p162_p10), [#allocation2]  }
  0x16   : > { %s191_s28 = scalar_select %p190_p11, %s534_s15, 1 }
  0x17   : > { %s464_s15 = scalar_lea.vmem %s639_s18, 256 }
  0x18   : > { %s397_s29 = sshll.u32 %s191_s28, 2  ;;  %p465_p12 = scmp.ne.s32.totalorder %s639_s18, %s464_s15 }
  0x19   : > { %s197_s5 = scalar_lea.vmem %s684_s0, %s397_s29  ;;  %s468_s28 = sshll.u32 %s545_s27, 4  ;;  %s469_s28 = int_to_ptr.vmem [resolvable:$false] %s468_s28 }
  0x1a   : > { %v387_v2 = vld.sshfl [vmem:[%s197_s5] sm:$0x33 pattern:$0x76325410]  ;;  %p466_p13 = pnand %p465_p12, %p606_p4  ;;  %s470_s29 = scalar_lea.vmem %s469_s28, 512 }
  0x1b   : > { %v217_v3 = vcombine.high %v387_v2, %v387_v2  ;;  %v224_v4 = vsel %vm222_vm0, %v387_v2, 0  ;;  %p471_p1 = scmp.lt.s32.totalorder %s639_s18, %s469_s28  ;;  %p472_p2 = scmp.lt.s32.totalorder %s470_s29, %s464_s15 }
  0x1c   : > { %p467_p0 = pneg %p466_p13 }
  0x1d   : > { %388 = vmatprep.subr.msk.bf16.mxu0 %vm222_vm0, %v217_v3  ;;  %p473_p3 = por %p472_p2, %p471_p1 }
  0x1e   : > { %230 = vmatpush1.bf16.msra.mxu0 %v224_v4 }
  0x1f   : > { %p474_p5 = pnand %p473_p3, %p467_p0 }
  0x21   : > { %389 = vmatmul.mubr.msk.bf16.vlgmr.msra.gmra.mrb[0].mxu0 %vm218_vm1, %v201_v5 }
  0x8f   : > { %v207_v6 = vpop.permute.xlu0 %206 }
  0xf4   : > { %v263_v7 = vpop.f32.mrb[0].mxu0 }
  0xf5   : > { %v264_v8 = vadd.f32 %v263_v7, %v207_v6  ;;  %v265_v9 = vpop.f32.mrb[1].mxu0 }
  0xf6   : > { %v266_v10 = vadd.f32 %v265_v9, %v207_v6  ;;  %v267_v11 = vpop.f32.mrb[2].mxu0 }
  0xf7   : > { %v390_v12 = vmul.f32 -1.442695, %v264_v8  ;;  %v268_v13 = vpop.f32.mrb[3].mxu0 }
  0xf8   : > { %v391_v14 = vmul.f32 -1.442695, %v266_v10 }
  0xf9   : > { %456 = vpow2.f32 %v390_v12 }
  0xfa   : > { %458 = vpow2.f32 %v391_v14 }
 0x103   : > { %v457_v15 = vpop.eup %456 }
 0x104   : > { %v459_v16 = vpop.eup %458  ;;  %v276_v17 = vadd.f32 1.0, %v457_v15 }
 0x105   : > { %v277_v18 = vadd.f32 1.0, %v459_v16 }
 0x106   : > { %460 = vrcp.f32 %v276_v17 }
 0x107   : > { %462 = vrcp.f32 %v277_v18 }
 0x110   : > { %v461_v19 = vpop.eup %460 }
 0x111   : > { %v463_v20 = vpop.eup %462  ;;  %v282_v21 = vmul.f32 %v461_v19, %v264_v8 }
 0x112   : > { %v283_v22 = vmul.f32 %v463_v20, %v266_v10 }
 0x113   : > { %284 = vst [vmem:[%s188_s11] sm:$0xff] %v282_v21 }
 0x114   : > { %285 = vst [vmem:[%s188_s11 + $0x8] sm:$0xff] %v283_v22 }
 0x115   : > { %477 = shalt.err (!%p474_p5)
}
 0x116   : > { %s478_s30 = scalar_lea.hbm %s637_s23, 256  ;;  %s482_s6 = scalar_lea.hbm %s687_s3, 512 }
 0x117   : > { %p479_p6 = scmp.ne.s32.totalorder %s637_s23, %s478_s30  ;;  %p483_p10 = scmp.lt.u32.totalorder %s637_s23, %s687_s3 }
 0x118   : > { %p484_p11 = scmp.lt.u32.totalorder %s482_s6, %s478_s30  ;;  %p486_p13 = scmp.lt.u32.totalorder %s478_s30, %s637_s23 }
 0x119   : > { %p480_p7 = pnand %p479_p6, %p606_p4 }
 0x11a   : > { %p485_p12 = por %p484_p11, %p483_p10 }
 0x11b   : > { %p481_p9 = pneg %p480_p7 }
 0x11c   : > { %p487_p0 = por %p486_p13, %p485_p12 }
 0x11e   : > { %p488_p1 = pnand %p487_p0, %p481_p9 }
 0x120   : > { %491 = shalt.err (!%p488_p1)
}
 0x121   : > { %399 = dma.vmem_to_hbm [thread:$0]  (%p606_p4), %s639_s18, 256, %s637_s23, %s287_s26  }
 0x122 PF: > { %p405_p2 = scmp.ge.s32.totalorder %s542_s17, 2  ;;  %s315_s9 = sand.u32 1, %s522_s12  }
 0x123   : > { %s316_s10 = scalar_lea.sflag [#allocation3], %s315_s9 }
 0x124   : > { %p402_p3 = pnand %p405_p2, %p613_p8 }
 0x126   : > { %517 = dma.done.wait (!%p402_p3), %s316_s10, 256  }
 0x127   : > { %519 = vsyncadd (!%p402_p3), %s316_s10, 4294967040  ;;  %s16_s17 = sadd.s32 1, %s542_s17   ;;  %s690_s12 = smov %s526_s13 }
 0x128   : > { %p13_p5 = scmp.ge.s32.totalorder %s16_s17, 4   ;;  %s691_s13 = smov %s530_s14 }
 0x129   : > { %s692_s14 = smov %s619_s25  ;;  %s693_s15 = smov %s538_s16 }
 0x12a   : > { %s694_s16 = smov %s696_s20  ;;  %15 = sbr.rel (!%p13_p5) target bundleno = 4 (0x4), region = 67 }
 0x131   :  { %321 = vsyncpa [#allocation3], 1 }
 0x132   :  { %323 = vsyncpa [#allocation3 + $0x1], 1 }

</bundles_post_ra>
